<compile_context>
chip_gen: v6e
topology: v6e:2x2x1
jax: 0.10.0
libtpu: 0.0.40
codegen_flags: <defaults>
</compile_context>

<pallas_src>
import jax
import jax.numpy as jnp
from jax.experimental import pallas as pl
from jax.experimental.pallas import tpu as pltpu


def _round_up(x: int, m: int) -> int:
    return ((x + m - 1) // m) * m


def _latent_sampling_kernel(x_ref, w_ref, b_ref, sigma_ref, eps_ref,
                            mu_ref, z_ref):
    # x_ref:     (TM, K)  hidden-state row tile
    # w_ref:     (K,  N)  fc_mu weight, laid out (in_features, latent_dim)
    # b_ref:     (1,  N)  fc_mu bias
    # sigma_ref: (1,  N)  exp(0.5 * logvar), broadcast over rows
    # eps_ref:   (TM, N)  standard-normal noise for reparameterization
    # mu_ref:    (TM, N)  output mu
    # z_ref:     (TM, N)  output z = mu + sigma * eps
    mu = jnp.dot(x_ref[...], w_ref[...], preferred_element_type=jnp.float32)
    mu = mu + b_ref[...].astype(jnp.float32)
    mu_ref[...] = mu.astype(mu_ref.dtype)
    z = mu + sigma_ref[...].astype(jnp.float32) * eps_ref[...].astype(jnp.float32)
    z_ref[...] = z.astype(z_ref.dtype)


def latent_sampling_forward(hidden_states, w_mu, b_mu, b_logvar, epsilon,
                            *, block_rows=512):
    """Pallas implementation of LatentSamplingLayer.forward (default config).

    Args:
      hidden_states: (B, T, C) float32
      w_mu:          (C, latent_dim) float32   (PyTorch fc_mu.weight transposed)
      b_mu:          (latent_dim,)   float32   (fc_mu.bias)
      b_logvar:      (latent_dim,)   float32   (b_logvar parameter)
      epsilon:       (B, T, latent_dim) float32 standard-normal noise
    Returns:
      (mu, logvar, z): mu/z are (B, T, latent_dim); logvar is (latent_dim,).
    """
    # TODO(synk): b_logvar_is_linear=True (logvar = Linear(hidden)) and the
    # use_additional_mlp_and_residual branch are not implemented (defaults off).
    # TODO(synk): epsilon is generated with jax.random.normal outside the kernel
    # for determinism; pltpu.prng_random_bits could generate it in-kernel and
    # save one HBM read of (B*T, latent_dim).
    B, T, K = hidden_states.shape
    Kw, N = w_mu.shape
    assert Kw == K, (Kw, K)
    assert epsilon.shape == (B, T, N)

    M = B * T
    x = hidden_states.reshape(M, K)
    eps2 = epsilon.reshape(M, N)

    # Lane-dense row tiling: TM multiple of 8, <= block_rows; pad rows to a
    # multiple of TM so every block is full-size.
    tm = min(block_rows, _round_up(M, 8))
    m_pad = _round_up(M, tm)
    if m_pad != M:
        x = jnp.pad(x, ((0, m_pad - M), (0, 0)))
        eps2 = jnp.pad(eps2, ((0, m_pad - M), (0, 0)))

    # Parameter glue (tiny, (latent_dim,)) stays in plain JAX.
    sigma = jnp.exp(0.5 * b_logvar.astype(jnp.float32)).reshape(1, N)
    bias = b_mu.astype(jnp.float32).reshape(1, N)

    dtype = hidden_states.dtype
    grid = (m_pad // tm,)

    mu_flat, z_flat = pl.pallas_call(
        _latent_sampling_kernel,
        out_shape=(
            jax.ShapeDtypeStruct((m_pad, N), dtype),
            jax.ShapeDtypeStruct((m_pad, N), dtype),
        ),
        grid_spec=pltpu.PrefetchScalarGridSpec(
            num_scalar_prefetch=0,
            grid=grid,
            in_specs=[
                pl.BlockSpec((tm, K), lambda i: (i, 0)),   # hidden rows
                pl.BlockSpec((K, N), lambda i: (0, 0)),    # weight (resident)
                pl.BlockSpec((1, N), lambda i: (0, 0)),    # bias   (resident)
                pl.BlockSpec((1, N), lambda i: (0, 0)),    # sigma  (resident)
                pl.BlockSpec((tm, N), lambda i: (i, 0)),   # epsilon rows
            ],
            out_specs=[
                pl.BlockSpec((tm, N), lambda i: (i, 0)),   # mu
                pl.BlockSpec((tm, N), lambda i: (i, 0)),   # z
            ],
        ),
        compiler_params=pltpu.CompilerParams(
            dimension_semantics=("parallel",),
            vmem_limit_bytes=48 * 1024 * 1024,
        ),
    )(x, w_mu, bias, sigma, eps2)

    mu = mu_flat[:M].reshape(B, T, N)
    z = z_flat[:M].reshape(B, T, N)
    logvar = b_logvar
    return mu, logvar, z


if __name__ == "__main__":
    # Small shapes consistent with the module: batch=2, seq=8, hidden=32,
    # latent_dim=32.
    B, T, C, LATENT = 2, 8, 32, 32

    key = jax.random.PRNGKey(0)
    k_h, k_w, k_b, k_lv, k_eps = jax.random.split(key, 5)

    hidden_states = jax.random.normal(k_h, (B, T, C), dtype=jnp.float32)
    w_mu = 0.05 * jax.random.normal(k_w, (C, LATENT), dtype=jnp.float32)
    b_mu = 0.01 * jax.random.normal(k_b, (LATENT,), dtype=jnp.float32)
    # Module initializes b_logvar to zeros; use a small non-zero value so the
    # sigma path is actually exercised by the check.
    b_logvar = 0.1 * jax.random.normal(k_lv, (LATENT,), dtype=jnp.float32)
    epsilon = jax.random.normal(k_eps, (B, T, LATENT), dtype=jnp.float32)

    mu, logvar, z = latent_sampling_forward(
        hidden_states, w_mu, b_mu, b_logvar, epsilon)
    mu, logvar, z = jax.block_until_ready((mu, logvar, z))

    # Pure-JAX reference.
    mu_ref = jnp.einsum("btc,cn->btn", hidden_states, w_mu) + b_mu
    sigma_ref = jnp.exp(0.5 * b_logvar)
    z_ref = mu_ref + sigma_ref * epsilon

    assert mu.shape == (B, T, LATENT)
    assert z.shape == (B, T, LATENT)
    assert logvar.shape == (LATENT,)
    assert jnp.allclose(mu, mu_ref, atol=1e-5, rtol=1e-5)
    assert jnp.allclose(logvar, b_logvar)
    assert jnp.allclose(z, z_ref, atol=1e-5, rtol=1e-5)

    print("KERNEL_OK")
</pallas_src>

<mosaic_0001>
module attributes {stable_mosaic.version = 11 : i64} {
  func.func @_latent_sampling_kernel(%arg0: i32, %arg1: memref<16x32xf32, #tpu.memory_space<vmem>>, %arg2: memref<32x32xf32, #tpu.memory_space<vmem>>, %arg3: memref<1x32xf32, #tpu.memory_space<vmem>>, %arg4: memref<1x32xf32, #tpu.memory_space<vmem>>, %arg5: memref<16x32xf32, #tpu.memory_space<vmem>>, %arg6: memref<16x32xf32, #tpu.memory_space<vmem>>, %arg7: memref<16x32xf32, #tpu.memory_space<vmem>>) attributes {dimension_semantics = [#tpu.dimension_semantics<parallel>], iteration_bounds = array<i64: 1>, scalar_prefetch = 0 : i64, scratch_operands = 0 : i64, tpu.core_type = #tpu.core_type<tc>, window_params = [{transform_indices = @transform_0, window_bounds = array<i64: 16, 32>}, {pipeline_mode = #tpu.pipeline_mode<synchronous>, transform_indices = @transform_1, window_bounds = array<i64: 32, 32>}, {pipeline_mode = #tpu.pipeline_mode<synchronous>, transform_indices = @transform_2, window_bounds = array<i64: 1, 32>}, {pipeline_mode = #tpu.pipeline_mode<synchronous>, transform_indices = @transform_3, window_bounds = array<i64: 1, 32>}, {transform_indices = @transform_4, window_bounds = array<i64: 16, 32>}, {transform_indices = @transform_5, window_bounds = array<i64: 16, 32>}, {transform_indices = @transform_6, window_bounds = array<i64: 16, 32>}]} {
    %c0 = arith.constant 0 : index
    %c0_0 = arith.constant 0 : index
    %0 = vector.load %arg1[%c0, %c0_0] : memref<16x32xf32, #tpu.memory_space<vmem>>, vector<16x32xf32>
    %c0_1 = arith.constant 0 : index
    %c0_2 = arith.constant 0 : index
    %1 = vector.load %arg2[%c0_1, %c0_2] : memref<32x32xf32, #tpu.memory_space<vmem>>, vector<32x32xf32>
    %cst = arith.constant dense<0.000000e+00> : vector<16x32xf32>
    %2 = tpu.matmul %0, %1, %cst {dimension_numbers = #tpu.dot_dimension_numbers<[1], [0], [0], [1], [0, 0, 1, 1], [], []>} : vector<16x32xf32>, vector<32x32xf32>, vector<16x32xf32> -> vector<16x32xf32>
    %c0_3 = arith.constant 0 : index
    %c0_4 = arith.constant 0 : index
    %3 = vector.load %arg3[%c0_3, %c0_4] : memref<1x32xf32, #tpu.memory_space<vmem>>, vector<1x32xf32>
    %4 = vector.broadcast %3 : vector<1x32xf32> to vector<16x32xf32>
    %5 = arith.addf %2, %4 : vector<16x32xf32>
    %c0_5 = arith.constant 0 : index
    %c0_6 = arith.constant 0 : index
    %6 = vector.load %arg6[%c0_5, %c0_6] : memref<16x32xf32, #tpu.memory_space<vmem>>, vector<16x32xf32>
    tpu.vector_store %arg6[%c0_5, %c0_6], %5 {strides = array<i32>} : memref<16x32xf32, #tpu.memory_space<vmem>>, vector<16x32xf32>,
    %c0_7 = arith.constant 0 : index
    %c0_8 = arith.constant 0 : index
    %7 = vector.load %arg4[%c0_7, %c0_8] : memref<1x32xf32, #tpu.memory_space<vmem>>, vector<1x32xf32>
    %c0_9 = arith.constant 0 : index
    %c0_10 = arith.constant 0 : index
    %8 = vector.load %arg5[%c0_9, %c0_10] : memref<16x32xf32, #tpu.memory_space<vmem>>, vector<16x32xf32>
    %9 = vector.broadcast %7 : vector<1x32xf32> to vector<16x32xf32>
    %10 = arith.mulf %9, %8 : vector<16x32xf32>
    %11 = arith.addf %5, %10 : vector<16x32xf32>
    %c0_11 = arith.constant 0 : index
    %c0_12 = arith.constant 0 : index
    %12 = vector.load %arg7[%c0_11, %c0_12] : memref<16x32xf32, #tpu.memory_space<vmem>>, vector<16x32xf32>
    tpu.vector_store %arg7[%c0_11, %c0_12], %11 {strides = array<i32>} : memref<16x32xf32, #tpu.memory_space<vmem>>, vector<16x32xf32>,
    return
  }
  func.func @transform_0(%arg0: i32) -> (i32, i32) {
    %c0_i32 = arith.constant 0 : i32
    %c0_i32_0 = arith.constant 0 : i32
    return %arg0, %c0_i32 : i32, i32
  }
  func.func @transform_1(%arg0: i32) -> (i32, i32) {
    %c0_i32 = arith.constant 0 : i32
    %c0_i32_0 = arith.constant 0 : i32
    %c0_i32_1 = arith.constant 0 : i32
    return %c0_i32, %c0_i32_0 : i32, i32
  }
  func.func @transform_2(%arg0: i32) -> (i32, i32) {
    %c0_i32 = arith.constant 0 : i32
    %c0_i32_0 = arith.constant 0 : i32
    %c0_i32_1 = arith.constant 0 : i32
    return %c0_i32, %c0_i32_0 : i32, i32
  }
  func.func @transform_3(%arg0: i32) -> (i32, i32) {
    %c0_i32 = arith.constant 0 : i32
    %c0_i32_0 = arith.constant 0 : i32
    %c0_i32_1 = arith.constant 0 : i32
    return %c0_i32, %c0_i32_0 : i32, i32
  }
  func.func @transform_4(%arg0: i32) -> (i32, i32) {
    %c0_i32 = arith.constant 0 : i32
    %c0_i32_0 = arith.constant 0 : i32
    return %arg0, %c0_i32 : i32, i32
  }
  func.func @transform_5(%arg0: i32) -> (i32, i32) {
    %c0_i32 = arith.constant 0 : i32
    %c0_i32_0 = arith.constant 0 : i32
    return %arg0, %c0_i32 : i32, i32
  }
  func.func @transform_6(%arg0: i32) -> (i32, i32) {
    %c0_i32 = arith.constant 0 : i32
    %c0_i32_0 = arith.constant 0 : i32
    return %arg0, %c0_i32 : i32, i32
  }
}

</mosaic_0001>

<bundles_post_ra>
// kernel: tpu_custom_call.1
= control target key start
LH: loop header
LB: loop body
LE: loop exit
PB: predicated region body
PF: predicated region fallthrough
CT: control target
= control target key end

     0   :  { %12 = vsyncpa [#allocation3], 0  ;;  %s431_s0 = inlined_call_operand.hbm [shape: f32[16,32], index: 0, kind: input, shape index: {}]   ;;  %s432_s1 = inlined_call_operand.hbm [shape: f32[32,32], index: 1, kind: input, shape index: {}]   ;;  %s433_s2 = inlined_call_operand.vmem [shape: f32[1,32], index: 2, kind: input, shape index: {}]   ;;  %s434_s3 = inlined_call_operand.vmem [shape: f32[1,32], index: 3, kind: input, shape index: {}]   ;;  %s435_s4 = inlined_call_operand.hbm [shape: f32[16,32], index: 4, kind: input, shape index: {}]   ;;  %s436_s5 = inlined_call_operand.hbm [shape: f32[16,32], index: 5, kind: output, shape index: {0}]   ;;  %s437_s6 = inlined_call_operand.hbm [shape: f32[16,32], index: 6, kind: output, shape index: {1}]  }
   0x1   :  { %13 = vsyncpa [#allocation6], 0 }
   0x2   :  { %14 = vsyncpa [#allocation4], 0 }
   0x3   :  { %15 = vsyncpa [#allocation10], 0  ;;  %s347_s21 = smov [#allocation5]   ;;  %s348_s23 = smov [#allocation2]  }
   0x4   :  { %s33_s22 = sshll.u32 %s347_s21, 4  ;;  %s21_s24 = sshll.u32 %s348_s23, 4  ;;  %s34_s22 = int_to_ptr.vmem [resolvable:$true] %s33_s22  ;;  %s22_s24 = int_to_ptr.vmem [resolvable:$true] %s21_s24 }
   0x5   :  { %s247_s25 = scalar_lea.vmem %s34_s22, 512  ;;  %p252_p1 = scmp.lt.s32.totalorder %s34_s22, %s34_s22 }
   0x6   :  { %p248_p0 = scmp.ne.s32.totalorder %s34_s22, %s247_s25  ;;  %p253_p2 = scmp.lt.s32.totalorder %s247_s25, %s247_s25 }
   0x8   :  { %p254_p3 = por %p253_p2, %p252_p1 }
   0xa   :  { %p255_p4 = pnand %p254_p3, %p248_p0 }
   0xc   :  { %258 = shalt.err (!%p255_p4)
}
   0xd   :  { %s349_s26 = smov 128   ;;  %s350_s27 = smov 8  }
   0xe   :  { %39 = dma.hbm_to_vmem [thread:$0]  %s432_s1, 512, %s34_s22, [#allocation6], %s349_s26, %s349_s26, %s350_s27  }
   0xf   :  { %s267_s30 = scalar_lea.vmem %s22_s24, 256  ;;  %p272_p6 = scmp.lt.s32.totalorder %s22_s24, %s22_s24 }
  0x10   :  { %p268_p5 = scmp.ne.s32.totalorder %s22_s24, %s267_s30  ;;  %p273_p7 = scmp.lt.s32.totalorder %s267_s30, %s267_s30 }
  0x12   :  { %p274_p8 = por %p273_p7, %p272_p6 }
  0x14   :  { %p275_p9 = pnand %p274_p8, %p268_p5 }
  0x16   :  { %278 = shalt.err (!%p275_p9)
}
  0x17   :  { %27 = dma.hbm_to_vmem [thread:$0]  %s431_s0, 256, %s22_s24, [#allocation3], %s349_s26, %s349_s26, %s350_s27  }
  0x18   :  { %s351_s9 = smov [#allocation7]  }
  0x19   :  { %s49_s10 = sshll.u32 %s351_s9, 4  ;;  %s50_s10 = int_to_ptr.vmem [resolvable:$true] %s49_s10 }
  0x1a   :  { %s287_s11 = scalar_lea.vmem %s50_s10, 256  ;;  %p292_p11 = scmp.lt.s32.totalorder %s50_s10, %s50_s10 }
  0x1b   :  { %p288_p10 = scmp.ne.s32.totalorder %s50_s10, %s287_s11  ;;  %p293_p12 = scmp.lt.s32.totalorder %s287_s11, %s287_s11 }
  0x1d   :  { %p294_p13 = por %p293_p12, %p292_p11 }
  0x1f   :  { %p295_p0 = pnand %p294_p13, %p288_p10 }
  0x21   :  { %298 = shalt.err (!%p295_p0)
}
  0x22   :  { %55 = dma.hbm_to_vmem [thread:$0]  %s435_s4, 256, %s50_s10, [#allocation6], %s349_s26, %s349_s26, %s350_s27  }
  0x23   :  { %339 = dma.done.wait [#allocation3], 256  }
  0x24   :  { %340 = vsyncadd [#allocation3], 4294967040 }
  0x25   :  { %341 = dma.done.wait [#allocation6], 768  }
  0x26   :  { %342 = vsyncadd [#allocation6], 4294966528  ;;  %vm78_vm0 = vcmask 261120   ;;  %v70_v0 = vld [vmem:[#allocation5 + $0x18] sm:$0xff]  ;;  %v69_v1 = vld [vmem:[#allocation5 + $0x10] sm:$0xff]  ;;  %s352_s15 = smov [#allocation8]  }
  0x27   :  { %221 = vmatprep.subr.mxu0 %v70_v0  ;;  %v65_v2 = vld [vmem:[#allocation2] sm:$0xff]  ;;  %v68_v3 = vld [vmem:[#allocation5 + $0x8] sm:$0xff]  ;;  %v67_v4 = vld [vmem:[#allocation5] sm:$0xff]  ;;  %s182_s16 = sshll.u32 %s352_s15, 4  ;;  %s353_s17 = smov [#allocation9]   ;;  %s183_s16 = int_to_ptr.vmem [resolvable:$true] %s182_s16 }
  0x28   :  { %222 = vmatpush3.msra.mxu0 %v70_v0  ;;  %229 = vmatprep.mubr.msk.f32.mxu0 %vm78_vm0, %v65_v2  ;;  %v66_v5 = vld [vmem:[#allocation2 + $0x8] sm:$0xff]  ;;  %v214_v6 = vld [vmem:[%s434_s3] ss:$0 sm:$0xff]  ;;  %v164_v7 = vld [vmem:[#allocation7 + $0x8] sm:$0xff]  ;;  %s194_s18 = sshll.u32 %s353_s17, 4  ;;  %p304_p2 = scmp.lt.s32.totalorder %s183_s16, %s183_s16  ;;  %s195_s18 = int_to_ptr.vmem [resolvable:$true] %s194_s18 }
  0x29   :  { %223 = vmatprep.subr.mxu0 %v69_v1  ;;  %v211_v8 = vld [vmem:[%s433_s2] ss:$0 sm:$0xff]  ;;  %v163_v9 = vld [vmem:[#allocation7] sm:$0xff]  ;;  %v172_v10 = vmul.f32 %v214_v6, %v164_v7  ;;  %s299_s2 = scalar_lea.vmem %s183_s16, 256 }
  0x2a   :  { %224 = vmatpush3.msra.mxu0 %v69_v1  ;;  %v171_v13 = vmul.f32 %v214_v6, %v163_v9  ;;  %p300_p1 = scmp.ne.s32.totalorder %s183_s16, %s299_s2  ;;  %p305_p3 = scmp.lt.s32.totalorder %s299_s2, %s299_s2 }
  0x2b   :  { %225 = vmatprep.subr.mxu0 %v68_v3 }
  0x2c   :  { %226 = vmatpush3.msra.mxu0 %v68_v3  ;;  %p306_p4 = por %p305_p3, %p304_p2 }
  0x2d   :  { %227 = vmatprep.subr.mxu0 %v67_v4 }
  0x2e   :  { %228 = vmatpush3.msra.mxu0 %v67_v4  ;;  %p307_p5 = pnand %p306_p4, %p300_p1 }
  0x2f   :  { %230 = vmatmul.mubr.msk.f32.vlgmr.msra.gmra.mxu0 %vm78_vm0, %v66_v5 }
  0xef   :  { %v231_v11 = vpop.f32.mrf.mxu0 }
  0xf0   :  { %v157_v12 = vadd.f32 %v231_v11, %v211_v8 }
  0xf1   :  { %v151_v14 = vpop.f32.mrf.mxu0 }
  0xf2   :  { %v174_v15 = vadd.f32 %v172_v10, %v157_v12  ;;  %161 = vst.msk [vmem:[#allocation8 + $0x8] sm:$0xff] %vm78_vm0, %v157_v12  ;;  %v152_v16 = vadd.f32 %v211_v8, %v151_v14 }
  0xf4   :  { %176 = vst.msk [vmem:[#allocation9 + $0x8] sm:$0xff] %vm78_vm0, %v174_v15  ;;  %v173_v17 = vadd.f32 %v171_v13, %v152_v16  ;;  %160 = vst.msk [vmem:[#allocation8] sm:$0xff] %vm78_vm0, %v152_v16 }
  0xf5   :  { %310 = shalt.err (!%p307_p5)
}
  0xf6   :  { %188 = dma.vmem_to_hbm [thread:$0]  %s183_s16, 256, %s436_s5, [#allocation4], %s349_s26, %s349_s26, %s350_s27   ;;  %175 = vst.msk [vmem:[#allocation9] sm:$0xff] %vm78_vm0, %v173_v17 }
  0xf7   :  { %s319_s20 = scalar_lea.vmem %s195_s18, 256  ;;  %p324_p7 = scmp.lt.s32.totalorder %s195_s18, %s195_s18 }
  0xf8   :  { %p320_p6 = scmp.ne.s32.totalorder %s195_s18, %s319_s20  ;;  %p325_p8 = scmp.lt.s32.totalorder %s319_s20, %s319_s20 }
  0xfa   :  { %p326_p9 = por %p325_p8, %p324_p7 }
  0xfc   :  { %p327_p10 = pnand %p326_p9, %p320_p6 }
  0xfe   :  { %330 = shalt.err (!%p327_p10)
}
  0xff   :  { %200 = dma.vmem_to_hbm [thread:$0]  %s195_s18, 256, %s437_s6, [#allocation10], %s349_s26, %s349_s26, %s350_s27  }
 0x100   :  { %343 = dma.done.wait [#allocation4], 256  }
 0x101   :  { %344 = vsyncadd [#allocation4], 4294967040 }
 0x102   :  { %345 = dma.done.wait [#allocation10], 256  }
 0x103   :  { %346 = vsyncadd [#allocation10], 4294967040 }
 0x104   :  { %207 = vsyncpa [#allocation3], 1 }
 0x105   :  { %208 = vsyncpa [#allocation6], 1 }
 0x106   :  { %209 = vsyncpa [#allocation4], 1 }
 0x107   :  { %210 = vsyncpa [#allocation10], 1 }

</bundles_post_ra>
